<compile_context>
chip_gen: v7x
topology: tpu7x:2x2x1
jax: 0.10.0
libtpu: 0.0.40
codegen_flags: <defaults>
</compile_context>

<pallas_src>
import functools

import numpy as np
import jax
import jax.numpy as jnp
from jax.experimental import pallas as pl
from jax.experimental.pallas import tpu as pltpu

LN_EPS = 1e-5  # torch.nn.LayerNorm default


def _round_up(x, m):
    return (x + m - 1) // m * m


def _layernorm(x, gamma, beta):
    # LayerNorm over the last dim (biased variance, like PyTorch).
    # Two-moment form: mean and E[x^2] have no data dependency between them.
    mean = jnp.mean(x, axis=-1, keepdims=True)
    mean_sq = jnp.mean(x * x, axis=-1, keepdims=True)
    var = jnp.maximum(mean_sq - mean * mean, 0.0)
    inv = jax.lax.rsqrt(var + LN_EPS)
    return (x - mean) * inv * gamma + beta


def _critic_kernel(state_ref, action_ref, w1_ref, v1_ref, w2a_ref, v2_ref,
                   q_ref, *, fc1, fc1_pad):
    state = state_ref[...].astype(jnp.float32)
    action = action_ref[...].astype(jnp.float32)

    v1 = v1_ref[...]           # (3, fc1): b1, ln1_gamma, ln1_beta
    v2 = v2_ref[...]           # (6, fc2): b2, ln2_gamma, ln2_beta, ba, wq, bq

    b1, g1, be1 = v1[0:1], v1[1:2], v1[2:3]
    b2, g2, be2, ba = v2[0:1], v2[1:2], v2[2:3], v2[3:4]
    wq_row = v2[4:5]           # (1, fc2) — final q weight as a row
    bq = v2[5:6, 0:1]          # (1, 1)   — final q bias

    # fc2 / action-value weights live in one row-stacked slab; the split is a
    # static, sublane-aligned slice (fc1_pad is a multiple of 8).
    w2a = w2a_ref[...]
    w2 = w2a[0:fc1]            # (fc1, fc2)       — zero pad rows excluded
    wa = w2a[fc1_pad:]         # (n_actions, fc2)

    # fc1 -> LayerNorm -> relu
    h1 = jnp.dot(state, w1_ref[...], preferred_element_type=jnp.float32) + b1
    h1 = jnp.maximum(_layernorm(h1, g1, be1), 0.0)

    # fc2 -> LayerNorm (no relu before the add, matching the reference module)
    h2 = jnp.dot(h1, w2, preferred_element_type=jnp.float32) + b2
    h2 = _layernorm(h2, g2, be2)

    # action branch
    av = jnp.dot(action, wa, preferred_element_type=jnp.float32) + ba

    # combine, relu, q head (output width 1 -> VPU mul + lane reduce, no MXU)
    sa = jnp.maximum(h2 + av, 0.0)
    q = jnp.sum(sa * wq_row, axis=-1, keepdims=True) + bq
    q_ref[...] = q.astype(q_ref.dtype)


@functools.partial(jax.jit, static_argnames=("batch_tile",))
def critic_forward(state, action, params, *, batch_tile=256):
    """Fused critic forward. batch_tile=256 matches the 256-row v6e/v7x MXU;
    pass batch_tile=128 on v5e (its MXU is 128x128)."""
    B, input_dims = state.shape
    n_actions = action.shape[1]
    fc1 = params["w1"].shape[1]
    fc2 = params["w2"].shape[1]
    fc1_pad = _round_up(fc1, 8)

    # Batch tile: whole (8-padded) batch when small, MXU-sized tiles otherwise.
    TB = min(batch_tile, _round_up(B, 8))
    B_pad = _round_up(B, TB)
    num_tiles = B_pad // TB
    if B_pad != B:
        pad = ((0, B_pad - B), (0, 0))
        state = jnp.pad(state, pad)
        action = jnp.pad(action, pad)

    # Pack the 12 small parameter tensors into two slabs and the fc2/action
    # weights into one slab -> 6 kernel operands total.
    v1 = jnp.stack([params["b1"], params["g1"], params["be1"]])            # (3, fc1)
    v2 = jnp.stack([params["b2"], params["g2"], params["be2"],
                    params["ba"], params["wq"],
                    jnp.broadcast_to(params["bq"], (fc2,))])               # (6, fc2)
    w2 = params["w2"]
    if fc1_pad != fc1:
        w2 = jnp.pad(w2, ((0, fc1_pad - fc1), (0, 0)))
    w2a = jnp.concatenate([w2, params["wa"]], axis=0)    # (fc1_pad + n_actions, fc2)

    resident = lambda i: (0, 0)   # constant block index -> weights loaded once
    in_specs = [
        pl.BlockSpec((TB, input_dims), lambda i: (i, 0)),       # state tile
        pl.BlockSpec((TB, n_actions), lambda i: (i, 0)),        # action tile
        pl.BlockSpec((input_dims, fc1), resident),              # w1
        pl.BlockSpec((3, fc1), resident),                       # b1 / g1 / be1
        pl.BlockSpec((fc1_pad + n_actions, fc2), resident),     # [w2 ; wa]
        pl.BlockSpec((6, fc2), resident),                       # b2/g2/be2/ba/wq/bq
    ]
    out_spec = pl.BlockSpec((TB, 1), lambda i: (i, 0))

    kernel = functools.partial(_critic_kernel, fc1=fc1, fc1_pad=fc1_pad)

    # TODO(synk): for very large batches a lane-dense (num_tiles, TB) output
    # layout would replace the masked width-1 stores; negligible at DDPG sizes.
    q = pl.pallas_call(
        kernel,
        out_shape=jax.ShapeDtypeStruct((B_pad, 1), jnp.float32),
        grid=(num_tiles,),
        in_specs=in_specs,
        out_specs=out_spec,
        compiler_params=pltpu.CompilerParams(
            dimension_semantics=("parallel",)),
    )(state, action, params["w1"], v1, w2a, v2)
    return q[:B]


def init_params(key, input_dims, fc1_dims, fc2_dims, n_actions):
    """Deterministic init mirroring CriticNetwork._init_weights.

    Note: the reference code uses 1/sqrt(weight.size(0)) == 1/sqrt(out_features)
    for the uniform bounds; we reproduce that (quirk and all).
    """
    ks = jax.random.split(key, 8)
    f1 = 1.0 / np.sqrt(fc1_dims)
    f2 = 1.0 / np.sqrt(fc2_dims)
    f3 = 0.003
    f4 = 1.0 / np.sqrt(fc2_dims)

    def u(k, shape, lim):
        return jax.random.uniform(k, shape, jnp.float32, -lim, lim)

    return {
        # weights stored transposed: (in_features, out_features)
        "w1": u(ks[0], (input_dims, fc1_dims), f1),
        "b1": u(ks[1], (fc1_dims,), f1),
        "g1": jnp.ones((fc1_dims,), jnp.float32),    # LayerNorm weight
        "be1": jnp.zeros((fc1_dims,), jnp.float32),  # LayerNorm bias
        "w2": u(ks[2], (fc1_dims, fc2_dims), f2),
        "b2": u(ks[3], (fc2_dims,), f2),
        "g2": jnp.ones((fc2_dims,), jnp.float32),
        "be2": jnp.zeros((fc2_dims,), jnp.float32),
        "wa": u(ks[4], (n_actions, fc2_dims), f4),
        "ba": u(ks[5], (fc2_dims,), f4),
        "wq": u(ks[6], (fc2_dims,), f3),             # q weight as a row
        "bq": u(ks[7], (), f3),
    }


def reference_forward(state, action, p):
    h1 = state @ p["w1"] + p["b1"]
    mean = h1.mean(-1, keepdims=True)
    var = ((h1 - mean) ** 2).mean(-1, keepdims=True)
    h1 = (h1 - mean) / jnp.sqrt(var + LN_EPS) * p["g1"] + p["be1"]
    h1 = jnp.maximum(h1, 0.0)
    h2 = h1 @ p["w2"] + p["b2"]
    mean = h2.mean(-1, keepdims=True)
    var = ((h2 - mean) ** 2).mean(-1, keepdims=True)
    h2 = (h2 - mean) / jnp.sqrt(var + LN_EPS) * p["g2"] + p["be2"]
    av = action @ p["wa"] + p["ba"]
    sa = jnp.maximum(h2 + av, 0.0)
    return sa @ p["wq"][:, None] + p["bq"]


def _check(B, input_dims, fc1, fc2, n_actions, seed):
    key = jax.random.PRNGKey(seed)
    k_state, k_action, k_params = jax.random.split(key, 3)
    state = jax.random.normal(k_state, (B, input_dims), jnp.float32)
    action = jax.random.normal(k_action, (B, n_actions), jnp.float32)
    params = init_params(k_params, input_dims, fc1, fc2, n_actions)

    q = jax.block_until_ready(critic_forward(state, action, params))
    q_ref = reference_forward(state, action, params)
    assert q.shape == (B, 1)
    np.testing.assert_allclose(np.asarray(q), np.asarray(q_ref),
                               rtol=1e-4, atol=2e-5)


if __name__ == "__main__":
    # Small shapes consistent with the module's forward.
    _check(B=8, input_dims=32, fc1=64, fc2=32, n_actions=8, seed=0)

    # Batch-padding path (B not a multiple of 8).
    _check(B=20, input_dims=32, fc1=64, fc2=32, n_actions=8, seed=1)

    # fc1 not a multiple of 8 -> exercises the padded [w2 ; wa] slab path.
    _check(B=16, input_dims=24, fc1=60, fc2=40, n_actions=6, seed=2)

    print("KERNEL_OK")
</pallas_src>

<mosaic_0001>
module attributes {stable_mosaic.version = 11 : i64} {
  func.func @_critic_kernel(%arg0: i32, %arg1: memref<8x32xf32, #tpu.memory_space<vmem>>, %arg2: memref<8x8xf32, #tpu.memory_space<vmem>>, %arg3: memref<32x64xf32, #tpu.memory_space<vmem>>, %arg4: memref<3x64xf32, #tpu.memory_space<vmem>>, %arg5: memref<72x32xf32, #tpu.memory_space<vmem>>, %arg6: memref<6x32xf32, #tpu.memory_space<vmem>>, %arg7: memref<8x1xf32, #tpu.memory_space<vmem>>) attributes {dimension_semantics = [#tpu.dimension_semantics<parallel>], iteration_bounds = array<i64: 1>, scalar_prefetch = 0 : i64, scratch_operands = 0 : i64, tpu.core_type = #tpu.core_type<tc>, window_params = [{transform_indices = @transform_0, window_bounds = array<i64: 8, 32>}, {transform_indices = @transform_1, window_bounds = array<i64: 8, 8>}, {pipeline_mode = #tpu.pipeline_mode<synchronous>, transform_indices = @transform_2, window_bounds = array<i64: 32, 64>}, {pipeline_mode = #tpu.pipeline_mode<synchronous>, transform_indices = @transform_3, window_bounds = array<i64: 3, 64>}, {pipeline_mode = #tpu.pipeline_mode<synchronous>, transform_indices = @transform_4, window_bounds = array<i64: 72, 32>}, {pipeline_mode = #tpu.pipeline_mode<synchronous>, transform_indices = @transform_5, window_bounds = array<i64: 6, 32>}, {transform_indices = @transform_6, window_bounds = array<i64: 8, 1>}]} {
    %c0 = arith.constant 0 : index
    %c0_0 = arith.constant 0 : index
    %0 = vector.load %arg1[%c0, %c0_0] : memref<8x32xf32, #tpu.memory_space<vmem>>, vector<8x32xf32>
    %c0_1 = arith.constant 0 : index
    %c0_2 = arith.constant 0 : index
    %1 = vector.load %arg2[%c0_1, %c0_2] : memref<8x8xf32, #tpu.memory_space<vmem>>, vector<8x8xf32>
    %c0_3 = arith.constant 0 : index
    %c0_4 = arith.constant 0 : index
    %2 = vector.load %arg4[%c0_3, %c0_4] : memref<3x64xf32, #tpu.memory_space<vmem>>, vector<3x64xf32>
    %c0_5 = arith.constant 0 : index
    %c0_6 = arith.constant 0 : index
    %3 = vector.load %arg6[%c0_5, %c0_6] : memref<6x32xf32, #tpu.memory_space<vmem>>, vector<6x32xf32>
    %4 = vector.extract_strided_slice %2 {offsets = [0, 0], sizes = [1, 64], strides = [1, 1]} : vector<3x64xf32> to vector<1x64xf32>
    %5 = vector.extract_strided_slice %2 {offsets = [1, 0], sizes = [1, 64], strides = [1, 1]} : vector<3x64xf32> to vector<1x64xf32>
    %6 = vector.extract_strided_slice %2 {offsets = [2, 0], sizes = [1, 64], strides = [1, 1]} : vector<3x64xf32> to vector<1x64xf32>
    %7 = vector.extract_strided_slice %3 {offsets = [0, 0], sizes = [1, 32], strides = [1, 1]} : vector<6x32xf32> to vector<1x32xf32>
    %8 = vector.extract_strided_slice %3 {offsets = [1, 0], sizes = [1, 32], strides = [1, 1]} : vector<6x32xf32> to vector<1x32xf32>
    %9 = vector.extract_strided_slice %3 {offsets = [2, 0], sizes = [1, 32], strides = [1, 1]} : vector<6x32xf32> to vector<1x32xf32>
    %10 = vector.extract_strided_slice %3 {offsets = [3, 0], sizes = [1, 32], strides = [1, 1]} : vector<6x32xf32> to vector<1x32xf32>
    %11 = vector.extract_strided_slice %3 {offsets = [4, 0], sizes = [1, 32], strides = [1, 1]} : vector<6x32xf32> to vector<1x32xf32>
    %12 = vector.extract_strided_slice %3 {offsets = [5, 0], sizes = [1, 1], strides = [1, 1]} : vector<6x32xf32> to vector<1x1xf32>
    %c0_7 = arith.constant 0 : index
    %c0_8 = arith.constant 0 : index
    %13 = vector.load %arg5[%c0_7, %c0_8] : memref<72x32xf32, #tpu.memory_space<vmem>>, vector<72x32xf32>
    %14 = vector.extract_strided_slice %13 {offsets = [0, 0], sizes = [64, 32], strides = [1, 1]} : vector<72x32xf32> to vector<64x32xf32>
    %15 = vector.extract_strided_slice %13 {offsets = [64, 0], sizes = [8, 32], strides = [1, 1]} : vector<72x32xf32> to vector<8x32xf32>
    %c0_9 = arith.constant 0 : index
    %c0_10 = arith.constant 0 : index
    %16 = vector.load %arg3[%c0_9, %c0_10] : memref<32x64xf32, #tpu.memory_space<vmem>>, vector<32x64xf32>
    %cst = arith.constant dense<0.000000e+00> : vector<8x64xf32>
    %17 = tpu.matmul %0, %16, %cst {dimension_numbers = #tpu.dot_dimension_numbers<[1], [0], [0], [1], [0, 0, 1, 1], [], []>} : vector<8x32xf32>, vector<32x64xf32>, vector<8x64xf32> -> vector<8x64xf32>
    %18 = vector.broadcast %4 : vector<1x64xf32> to vector<8x64xf32>
    %19 = arith.addf %17, %18 : vector<8x64xf32>
    %cst_11 = arith.constant dense<0.000000e+00> : vector<8xf32>
    %20 = vector.multi_reduction <add>, %19, %cst_11 [1] : vector<8x64xf32> to vector<8xf32>
    %21 = vector.shape_cast %20 : vector<8xf32> to vector<8x1xf32>
    %cst_12 = arith.constant 6.400000e+01 : f32
    %22 = vector.broadcast %cst_12 : f32 to vector<8x1xf32>
    %23 = arith.divf %21, %22 : vector<8x1xf32>
    %24 = arith.mulf %19, %19 : vector<8x64xf32>
    %cst_13 = arith.constant dense<0.000000e+00> : vector<8xf32>
    %25 = vector.multi_reduction <add>, %24, %cst_13 [1] : vector<8x64xf32> to vector<8xf32>
    %26 = vector.shape_cast %25 : vector<8xf32> to vector<8x1xf32>
    %cst_14 = arith.constant 6.400000e+01 : f32
    %27 = vector.broadcast %cst_14 : f32 to vector<8x1xf32>
    %28 = arith.divf %26, %27 : vector<8x1xf32>
    %29 = arith.mulf %23, %23 : vector<8x1xf32>
    %30 = arith.subf %28, %29 : vector<8x1xf32>
    %cst_15 = arith.constant 0.000000e+00 : f32
    %31 = vector.broadcast %cst_15 : f32 to vector<8x1xf32>
    %32 = arith.maximumf %30, %31 : vector<8x1xf32>
    %cst_16 = arith.constant 9.99999974E-6 : f32
    %33 = vector.broadcast %cst_16 : f32 to vector<8x1xf32>
    %34 = arith.addf %32, %33 : vector<8x1xf32>
    %35 = math.rsqrt %34 : vector<8x1xf32>
    %36 = vector.broadcast %23 : vector<8x1xf32> to vector<8x64xf32>
    %37 = arith.subf %19, %36 : vector<8x64xf32>
    %38 = vector.broadcast %35 : vector<8x1xf32> to vector<8x64xf32>
    %39 = arith.mulf %37, %38 : vector<8x64xf32>
    %40 = vector.broadcast %5 : vector<1x64xf32> to vector<8x64xf32>
    %41 = arith.mulf %39, %40 : vector<8x64xf32>
    %42 = vector.broadcast %6 : vector<1x64xf32> to vector<8x64xf32>
    %43 = arith.addf %41, %42 : vector<8x64xf32>
    %cst_17 = arith.constant 0.000000e+00 : f32
    %44 = vector.broadcast %cst_17 : f32 to vector<8x64xf32>
    %45 = arith.maximumf %43, %44 : vector<8x64xf32>
    %cst_18 = arith.constant dense<0.000000e+00> : vector<8x32xf32>
    %46 = tpu.matmul %45, %14, %cst_18 {dimension_numbers = #tpu.dot_dimension_numbers<[1], [0], [0], [1], [0, 0, 1, 1], [], []>} : vector<8x64xf32>, vector<64x32xf32>, vector<8x32xf32> -> vector<8x32xf32>
    %47 = vector.broadcast %7 : vector<1x32xf32> to vector<8x32xf32>
    %48 = arith.addf %46, %47 : vector<8x32xf32>
    %cst_19 = arith.constant dense<0.000000e+00> : vector<8xf32>
    %49 = vector.multi_reduction <add>, %48, %cst_19 [1] : vector<8x32xf32> to vector<8xf32>
    %50 = vector.shape_cast %49 : vector<8xf32> to vector<8x1xf32>
    %cst_20 = arith.constant 3.200000e+01 : f32
    %51 = vector.broadcast %cst_20 : f32 to vector<8x1xf32>
    %52 = arith.divf %50, %51 : vector<8x1xf32>
    %53 = arith.mulf %48, %48 : vector<8x32xf32>
    %cst_21 = arith.constant dense<0.000000e+00> : vector<8xf32>
    %54 = vector.multi_reduction <add>, %53, %cst_21 [1] : vector<8x32xf32> to vector<8xf32>
    %55 = vector.shape_cast %54 : vector<8xf32> to vector<8x1xf32>
    %cst_22 = arith.constant 3.200000e+01 : f32
    %56 = vector.broadcast %cst_22 : f32 to vector<8x1xf32>
    %57 = arith.divf %55, %56 : vector<8x1xf32>
    %58 = arith.mulf %52, %52 : vector<8x1xf32>
    %59 = arith.subf %57, %58 : vector<8x1xf32>
    %cst_23 = arith.constant 0.000000e+00 : f32
    %60 = vector.broadcast %cst_23 : f32 to vector<8x1xf32>
    %61 = arith.maximumf %59, %60 : vector<8x1xf32>
    %cst_24 = arith.constant 9.99999974E-6 : f32
    %62 = vector.broadcast %cst_24 : f32 to vector<8x1xf32>
    %63 = arith.addf %61, %62 : vector<8x1xf32>
    %64 = math.rsqrt %63 : vector<8x1xf32>
    %65 = vector.broadcast %52 : vector<8x1xf32> to vector<8x32xf32>
    %66 = arith.subf %48, %65 : vector<8x32xf32>
    %67 = vector.broadcast %64 : vector<8x1xf32> to vector<8x32xf32>
    %68 = arith.mulf %66, %67 : vector<8x32xf32>
    %69 = vector.broadcast %8 : vector<1x32xf32> to vector<8x32xf32>
    %70 = arith.mulf %68, %69 : vector<8x32xf32>
    %71 = vector.broadcast %9 : vector<1x32xf32> to vector<8x32xf32>
    %72 = arith.addf %70, %71 : vector<8x32xf32>
    %cst_25 = arith.constant dense<0.000000e+00> : vector<8x32xf32>
    %73 = tpu.matmul %1, %15, %cst_25 {dimension_numbers = #tpu.dot_dimension_numbers<[1], [0], [0], [1], [0, 0, 1, 1], [], []>} : vector<8x8xf32>, vector<8x32xf32>, vector<8x32xf32> -> vector<8x32xf32>
    %74 = vector.broadcast %10 : vector<1x32xf32> to vector<8x32xf32>
    %75 = arith.addf %73, %74 : vector<8x32xf32>
    %76 = arith.addf %72, %75 : vector<8x32xf32>
    %cst_26 = arith.constant 0.000000e+00 : f32
    %77 = vector.broadcast %cst_26 : f32 to vector<8x32xf32>
    %78 = arith.maximumf %76, %77 : vector<8x32xf32>
    %79 = vector.broadcast %11 : vector<1x32xf32> to vector<8x32xf32>
    %80 = arith.mulf %78, %79 : vector<8x32xf32>
    %cst_27 = arith.constant dense<0.000000e+00> : vector<8xf32>
    %81 = vector.multi_reduction <add>, %80, %cst_27 [1] : vector<8x32xf32> to vector<8xf32>
    %82 = vector.shape_cast %81 : vector<8xf32> to vector<8x1xf32>
    %83 = vector.broadcast %12 : vector<1x1xf32> to vector<8x1xf32>
    %84 = arith.addf %82, %83 : vector<8x1xf32>
    %c0_28 = arith.constant 0 : index
    %c0_29 = arith.constant 0 : index
    %85 = vector.load %arg7[%c0_28, %c0_29] : memref<8x1xf32, #tpu.memory_space<vmem>>, vector<8x1xf32>
    tpu.vector_store %arg7[%c0_28, %c0_29], %84 {strides = array<i32>} : memref<8x1xf32, #tpu.memory_space<vmem>>, vector<8x1xf32>,
    return
  }
  func.func @transform_0(%arg0: i32) -> (i32, i32) {
    %c0_i32 = arith.constant 0 : i32
    %c0_i32_0 = arith.constant 0 : i32
    return %arg0, %c0_i32 : i32, i32
  }
  func.func @transform_1(%arg0: i32) -> (i32, i32) {
    %c0_i32 = arith.constant 0 : i32
    %c0_i32_0 = arith.constant 0 : i32
    return %arg0, %c0_i32 : i32, i32
  }
  func.func @transform_2(%arg0: i32) -> (i32, i32) {
    %c0_i32 = arith.constant 0 : i32
    %c0_i32_0 = arith.constant 0 : i32
    %c0_i32_1 = arith.constant 0 : i32
    return %c0_i32, %c0_i32_0 : i32, i32
  }
  func.func @transform_3(%arg0: i32) -> (i32, i32) {
    %c0_i32 = arith.constant 0 : i32
    %c0_i32_0 = arith.constant 0 : i32
    %c0_i32_1 = arith.constant 0 : i32
    return %c0_i32, %c0_i32_0 : i32, i32
  }
  func.func @transform_4(%arg0: i32) -> (i32, i32) {
    %c0_i32 = arith.constant 0 : i32
    %c0_i32_0 = arith.constant 0 : i32
    %c0_i32_1 = arith.constant 0 : i32
    return %c0_i32, %c0_i32_0 : i32, i32
  }
  func.func @transform_5(%arg0: i32) -> (i32, i32) {
    %c0_i32 = arith.constant 0 : i32
    %c0_i32_0 = arith.constant 0 : i32
    %c0_i32_1 = arith.constant 0 : i32
    return %c0_i32, %c0_i32_0 : i32, i32
  }
  func.func @transform_6(%arg0: i32) -> (i32, i32) {
    %c0_i32 = arith.constant 0 : i32
    %c0_i32_0 = arith.constant 0 : i32
    return %arg0, %c0_i32 : i32, i32
  }
}

</mosaic_0001>

<bundles_post_ra>
// kernel: critic_forward.1
= control target key start
LH: loop header
LB: loop body
LE: loop exit
PB: predicated region body
PF: predicated region fallthrough
CT: control target
= control target key end

     0   :  { %v429_v0 = vmov 0.0|0.0   ;;  %vm430_vm0 = vmmov 0   ;;  %v431_v4 = vmov 0.0   ;;  %vm44_vm1 = vcmask 261120   ;;  %s539_s2 = inlined_call_operand.vmem [shape: f32[32,64], index: 2, kind: input, shape index: {}]   ;;  %s540_s0 = inlined_call_operand.vmem [shape: f32[8,32], index: 0, kind: input, shape index: {}]   ;;  %s541_s3 = inlined_call_operand.vmem [shape: f32[3,64], index: 3, kind: input, shape index: {}]   ;;  %s542_s4 = inlined_call_operand.vmem [shape: f32[72,32], index: 4, kind: input, shape index: {}]   ;;  %s543_s1 = inlined_call_operand.vmem [shape: f32[8,8], index: 1, kind: input, shape index: {}]   ;;  %s544_s5 = inlined_call_operand.vmem [shape: f32[6,32], index: 5, kind: input, shape index: {}]   ;;  %s545_s6 = inlined_call_operand.vmem [shape: f32[8,1], index: 6, kind: output, shape index: {}]  }
   0x1   :  { %404 = vmatprep.subr.bf16.mxu0 %v429_v0  ;;  %v36_v1 = vld [vmem:[%s539_s2] sm:$0xff]  ;;  %v37_v2 = vld [vmem:[%s539_s2 + $0x8] sm:$0xff]  ;;  %v38_v3 = vld [vmem:[%s539_s2 + $0x10] sm:$0xff]  ;;  %377 = vmatprep.mubr.msk.f32.mxu0 %vm430_vm0, %v431_v4  ;;  %v40_v9 = vlaneseq  ;;  %vm118_vm2 = vcmask 523264   ;;  %vm255_vm3 = vcmask 64512   ;;  %vm344_vm4 = vcmask 7168  }
   0x2   :  { %v405_v5 = vpack.c.bf16 %v37_v2, %v36_v1  ;;  %v39_v6 = vld [vmem:[%s539_s2 + $0x18] sm:$0xff]  ;;  %410 = vmatprep.subr.bf16.mxu1 %v429_v0  ;;  %396 = vmatprep.mubr.msk.f32.mxu1 %vm430_vm0, %v431_v4  ;;  %v23_v8 = vld [vmem:[%s540_s0] sm:$0xff]  ;;  %v28_v21 = vld [vmem:[%s542_s4 + $0x8] sm:$0xff] }
   0x3   :  { %v408_v7 = vpack.c.bf16 %v39_v6, %v38_v3  ;;  %v486_v10 = vshrl.u32 %v40_v9, 7  ;;  %v25_v12 = vld [vmem:[%s541_s3] sm:$0x7]  ;;  %v29_v22 = vld [vmem:[%s542_s4 + $0x10] sm:$0xff]  ;;  %v30_v24 = vld [vmem:[%s542_s4 + $0x18] sm:$0xff] }
   0x4   :  { %406 = vmatpush3.bf16.msra.mxu0 %v405_v5  ;;  %v27_v20 = vld [vmem:[%s542_s4] sm:$0xff]  ;;  %v414_v25 = vpack.c.bf16 %v30_v24, %v29_v22  ;;  %v32_v27 = vld [vmem:[%s542_s4 + $0x28] sm:$0xff]  ;;  %v33_v29 = vld [vmem:[%s542_s4 + $0x30] sm:$0xff] }
   0x5   :  { %407 = vmatprep.subr.bf16.mxu0 %v429_v0  ;;  %v42_v11 = vsub.s32 0, %v486_v10  ;;  %v411_v23 = vpack.c.bf16 %v28_v21, %v27_v20  ;;  %v31_v26 = vld [vmem:[%s542_s4 + $0x20] sm:$0xff]  ;;  %v34_v30 = vld [vmem:[%s542_s4 + $0x38] sm:$0xff]  ;;  %v138_v42 = vsub.s32 1, %v486_v10  ;;  %v143_v43 = vsub.s32 2, %v486_v10 }
   0x6   :  { %v417_v28 = vpack.c.bf16 %v32_v27, %v31_v26  ;;  %v420_v31 = vpack.c.bf16 %v34_v30, %v33_v29  ;;  %v35_v32 = vld [vmem:[%s542_s4 + $0x40] sm:$0xff]  ;;  %v253_v6 = vsub.s32 3, %v486_v10 }
   0x7   :  { %v43_v13 = vrot.slane %v25_v12, %v42_v11  ;;  %412 = vmatpush3.bf16.msra.mxu1 %v411_v23  ;;  %v24_v33 = vld [vmem:[%s543_s1] sm:$0xff]  ;;  %v139_v44 = vrot.slane %v25_v12, %v138_v42  ;;  %v144_v47 = vrot.slane %v25_v12, %v143_v43  ;;  %v341_v23 = vsub.s32 5, %v486_v10 }
   0x8   :  { %409 = vmatpush3.bf16.msra.mxu0 %v408_v7  ;;  %413 = vmatprep.subr.bf16.mxu1 %v429_v0  ;;  %v26_v52 = vld [vmem:[%s544_s5] sm:$0x3f] }
   0x9   :  { %399 = vmatprep.subr.mxu0 %v431_v4  ;;  %v150_v53 = vrot.slane %v26_v52, %v42_v11  ;;  %v254_v9 = vrot.slane %v26_v52, %v253_v6  ;;  %v342_v24 = vrot.slane %v26_v52, %v341_v23 }
   0xb   :  { %378 = vmatmul.mubr.msk.f32.vlgmr.msra.gmra.mrb[0].mxu0 %vm44_vm1, %v23_v8  ;;  %415 = vmatpush3.bf16.msra.mxu1 %v414_v25  ;;  %v244_v8 = vrot.slane %v26_v52, %v138_v42 }
   0xc   :  { %401 = vmatprep.mubr.msk.f32.mxu0 %vm430_vm0, %v431_v4  ;;  %416 = vmatprep.subr.bf16.mxu1 %v429_v0 }
   0xd   :  { %400 = vmatpush3.msra.mxu0 %v35_v32 }
   0xf   :  { %418 = vmatpush3.bf16.msra.mxu1 %v417_v28  ;;  %402 = vmatmul.mubr.msk.f32.vlgmr.msra.gmra.mrb[2].mxu0 %vm255_vm3, %v24_v33 }
  0x10   :  { %419 = vmatprep.subr.bf16.mxu1 %v429_v0 }
  0x13   :  { %421 = vmatpush3.bf16.msra.mxu1 %v420_v31 }
  0xde   :  { %v114_v14 = vpop.f32.mrb[0].mxu0 }
  0xdf   :  { %v115_v15 = vadd.f32 %v114_v14, %v43_v13  ;;  %v379_v16 = vpop.f32.mrb[1].mxu0  ;;  %v249_v13 = vrot.slane %v26_v52, %v143_v43 }
  0xe0   :  { %v333_v16 = vsub.s32 4, %v486_v10 }
  0xe1   :  { %v119_v17 = vsel %vm118_vm2, %v115_v15, 0.0  ;;  %v124_v18 = vmul.f32 %v115_v15, %v115_v15 }
  0xe2   :  { %120 = vadd.xlane.f32.xlu0 %v119_v17  ;;  %v325_v60 = vpop.f32.mrb[2].mxu0 }
  0xe3   :  { %v125_v19 = vsel %vm118_vm2, %v124_v18, 0.0  ;;  %v403_v61 = vpop.f32.mrb[3].mxu0 }
  0xe6   :  { %126 = vadd.xlane.f32.xlu0 %v125_v19  ;;  %v334_v19 = vrot.slane %v26_v52, %v333_v16 }
 0x16f   :  { %v121_v34 = vpop.xlane.xlu0 %120 }
 0x170   :  { %v123_v35 = vmul.f32 0.015625, %v121_v34 }
 0x172   :  { %v129_v37 = vmul.f32 %v123_v35, %v123_v35  ;;  %v134_v45 = vsub.f32 %v115_v15, %v123_v35  ;;  %v326_v15 = vadd.f32 %v325_v60, %v254_v9 }
 0x173   :  { %v127_v36 = vpop.xlane.xlu0 %126 }
 0x174   :  { %v128_v38 = vmul.f32 0.015625, %v127_v36 }
 0x176   :  { %v130_v39 = vsub.f32 %v128_v38, %v129_v37 }
 0x178   :  { %v131_v40 = vmax.f32 %v130_v39, 0.0 }
 0x17a   :  { %v132_v41 = vadd.f32 1e-05, %v131_v40 }
 0x17c   :  { %425 = vrsqrt.f32 %v132_v41 }
 0x186   :  { %v426_v46 = vpop.eup %425 }
 0x187   :  { %v135_v48 = vmul.f32 %v426_v46, %v134_v45 }
 0x189   :  { %v140_v49 = vmul.f32 %v139_v44, %v135_v48 }
 0x18b   :  { %v145_v50 = vadd.f32 %v144_v47, %v140_v49 }
 0x18d   :  { %v146_v51 = vmax.f32 %v145_v50, 0.0 }
 0x18f   :  { %397 = vmatmul.mubr.msk.f32.vlgmr.msra.gmra.mrb[0].mxu1 %vm118_vm2, %v146_v51 }
 0x262   :  { %v220_v54 = vpop.f32.mrb[0].mxu1 }
 0x263   :  { %v221_v55 = vadd.f32 %v220_v54, %v150_v53  ;;  %v398_v56 = vpop.f32.mrb[1].mxu1 }
 0x265   :  { %v224_v57 = vsel %vm44_vm1, %v221_v55, 0.0  ;;  %v229_v58 = vmul.f32 %v221_v55, %v221_v55 }
 0x266   :  { %225 = vadd.xlane.f32.xlu1 %v224_v57 }
 0x267   :  { %v230_v59 = vsel %vm44_vm1, %v229_v58, 0.0 }
 0x26a   :  { %231 = vadd.xlane.f32.xlu1 %v230_v59 }
 0x2f3   :  { %v226_v62 = vpop.xlane.xlu1 %225 }
 0x2f4   :  { %v228_v63 = vmul.f32 0.03125, %v226_v62 }
 0x2f6   :  { %v234_v1 = vmul.f32 %v228_v63, %v228_v63  ;;  %v239_v7 = vsub.f32 %v221_v55, %v228_v63 }
 0x2f7   :  { %v232_v0 = vpop.xlane.xlu1 %231 }
 0x2f8   :  { %v233_v2 = vmul.f32 0.03125, %v232_v0 }
 0x2fa   :  { %v235_v3 = vsub.f32 %v233_v2, %v234_v1 }
 0x2fc   :  { %v236_v4 = vmax.f32 %v235_v3, 0.0 }
 0x2fe   :  { %v237_v5 = vadd.f32 1e-05, %v236_v4 }
 0x300   :  { %427 = vrsqrt.f32 %v237_v5 }
 0x30a   :  { %v428_v11 = vpop.eup %427 }
 0x30b   :  { %v240_v12 = vmul.f32 %v428_v11, %v239_v7 }
 0x30d   :  { %v245_v14 = vmul.f32 %v244_v8, %v240_v12 }
 0x30f   :  { %v250_v17 = vadd.f32 %v249_v13, %v245_v14 }
 0x311   :  { %v329_v18 = vadd.f32 %v326_v15, %v250_v17 }
 0x313   :  { %v330_v20 = vmax.f32 %v329_v18, 0.0 }
 0x315   :  { %v335_v21 = vmul.f32 %v334_v19, %v330_v20 }
 0x317   :  { %v336_v22 = vsel %vm44_vm1, %v335_v21, 0.0 }
 0x318   :  { %337 = vadd.xlane.f32.xlu0 %v336_v22 }
 0x3a5   :  { %v338_v25 = vpop.xlane.xlu0 %337 }
 0x3a6   :  { %v343_v26 = vadd.f32 %v342_v24, %v338_v25 }
 0x3a8   :  { %345 = vst.msk [vmem:[%s545_s6] sm:$0xff] %vm344_vm4, %v343_v26 }

</bundles_post_ra>
